<compile_context>
chip_gen: v6e
topology: v6e:2x2x1
jax: 0.10.0
libtpu: 0.0.40
codegen_flags: <defaults>
</compile_context>

<pallas_src>
import jax
import jax.numpy as jnp
from jax import lax
from jax.experimental import pallas as pl
from jax.experimental.pallas import tpu as pltpu


# ------------------------------ hardware budgeting --------------------------------
def _round_up(a, b):
    return ((a + b - 1) // b) * b


def _tpu_config():
    """(vmem_bytes, num_tensorcores, is_v5e) — generation aware, safe fallbacks."""
    vmem = None
    try:
        vmem = int(pltpu.get_tpu_info().vmem_capacity_bytes)
    except Exception:
        vmem = None
    kind = ""
    try:
        kind = jax.devices()[0].device_kind.lower()
    except Exception:
        pass
    is_v7 = ("v7" in kind) or ("tpu7" in kind) or ("7x" in kind)
    if vmem is None:
        # generation-aware fallback: 64 MiB only for v7x, 128 MiB for v5e/v6e
        vmem = (64 if is_v7 else 128) * 1024 * 1024
    num_tc = 2 if is_v7 else 1
    is_v5e = ("v5" in kind) and (("lite" in kind) or ("v5e" in kind))
    return vmem, num_tc, is_v5e


def _pick_row_block(nc, row_bytes, target_bytes, sub, min_blocks=1):
    """Rows per block: a multiple of `sub` (or nc itself when nc <= sub) sized so
    row_block*row_bytes <~ target_bytes; when min_blocks > 1 (v7x megacore) also
    small enough that the grid gets >= min_blocks steps, if the rows allow it.
    Ragged last blocks are fine (Pallas masks boundary writes)."""
    if nc <= sub:
        return nc
    max_rb = (nc // sub) * sub
    cap = (target_bytes // max(1, row_bytes)) // sub * sub
    rb = max(sub, min(max_rb, cap))
    if min_blocks > 1:
        limit = ((nc - 1) // (min_blocks - 1)) // sub * sub   # rb <= limit => >= min_blocks steps
        if limit >= sub:
            rb = min(rb, limit)
    return rb


# ----------------------------- fused norm kernel -------------------------------
def _make_fused_kernel(hw, eps, chunk):
    inv_n = 1.0 / hw
    inv_nm1 = 1.0 / max(hw - 1, 1)
    n_full = hw // chunk
    tail = hw - n_full * chunk
    spans = [(i * chunk, chunk) for i in range(n_full)]
    if tail:
        spans.append((n_full * chunk, tail))

    def kernel(x_ref, gb_ref, o_ref):
        rows = x_ref.shape[0]
        # per-row pivot -> numerically stable one-pass (shifted) variance
        pivot = x_ref[:, 0:1].astype(jnp.float32)

        s = jnp.zeros((rows, 1), jnp.float32)
        sq = jnp.zeros((rows, 1), jnp.float32)
        # stream x in lane chunks (static slices): bounds the f32 temporary to one
        # chunk instead of a full-block copy (matters most for bf16 inputs / v7x VMEM)
        for start, size in spans:
            d = x_ref[:, pl.ds(start, size)].astype(jnp.float32) - pivot
            s = s + jnp.sum(d, axis=-1, keepdims=True)
            sq = sq + jnp.sum(d * d, axis=-1, keepdims=True)

        dmean = s * inv_n
        var = jnp.maximum((sq - hw * dmean * dmean) * inv_nm1, 0.0)
        inv_std = lax.rsqrt(var + eps)
        scale = gb_ref[:, 0:1].astype(jnp.float32) * inv_std          # (1+gamma)/std
        offset = gb_ref[:, 1:2].astype(jnp.float32) - scale * (pivot + dmean)

        for start, size in spans:
            xc = x_ref[:, pl.ds(start, size)].astype(jnp.float32)
            o_ref[:, pl.ds(start, size)] = (xc * scale + offset).astype(o_ref.dtype)

    return kernel


# ------------------------ two-pass kernels (large H*W) --------------------------
def _make_stats_kernel(hw, eps, col_block):
    inv_n = 1.0 / hw
    inv_nm1 = 1.0 / max(hw - 1, 1)
    ragged_cols = (hw % col_block) != 0

    def kernel(x_ref, gb_ref, so_ref, sum_ref, sq_ref, piv_ref):
        k = pl.program_id(1)

        @pl.when(k == 0)
        def _():
            sum_ref[...] = jnp.zeros_like(sum_ref)
            sq_ref[...] = jnp.zeros_like(sq_ref)
            piv_ref[...] = x_ref[:, 0:1].astype(jnp.float32)   # per-row pivot (col 0)

        d = x_ref[...].astype(jnp.float32) - piv_ref[...]
        if ragged_cols:
            # mask out-of-range lanes of the (partial) last column block
            col = lax.broadcasted_iota(jnp.int32, d.shape, 1) + k * col_block
            d = jnp.where(col < hw, d, 0.0)
        sum_ref[...] += jnp.sum(d, axis=-1, keepdims=True)
        sq_ref[...] += jnp.sum(d * d, axis=-1, keepdims=True)

        @pl.when(k == pl.num_programs(1) - 1)
        def _():
            dmean = sum_ref[...] * inv_n
            var = jnp.maximum((sq_ref[...] - hw * dmean * dmean) * inv_nm1, 0.0)
            inv_std = lax.rsqrt(var + eps)
            scale = gb_ref[:, 0:1].astype(jnp.float32) * inv_std
            # two column stores (avoid a lane-axis concatenate)
            so_ref[:, 0:1] = scale
            so_ref[:, 1:2] = gb_ref[:, 1:2].astype(jnp.float32) - scale * (piv_ref[...] + dmean)

    return kernel


def _apply_kernel(x_ref, so_ref, o_ref):
    scale = so_ref[:, 0:1]
    offset = so_ref[:, 1:2]
    o_ref[...] = (x_ref[...].astype(jnp.float32) * scale + offset).astype(o_ref.dtype)


# ------------------------------- norm wrapper -----------------------------------
def adain_norm_pallas(x, gamma, beta, *, eps=1e-6, max_block_bytes=None):
    """x: (N, C, H, W); gamma, beta: (N, C) -> (1+gamma)*InstanceNorm(x) + beta."""
    n, c, h, w = x.shape
    nc, hw = n * c, h * w
    assert hw > 1, "unbiased instance-norm variance needs H*W > 1"

    x2d = x.reshape(nc, hw)
    # pack (1+gamma, beta) into one lane-2 array: one tiny DMA per block
    gb = jnp.stack([(1.0 + gamma).reshape(-1), beta.reshape(-1)], axis=-1)
    gb = gb.astype(jnp.float32)

    itemsize = jnp.dtype(x.dtype).itemsize
    sub = 8 * max(1, 4 // itemsize)          # min sublane tile: 8 f32 / 16 bf16 / 32 i8

    vmem_bytes, num_tc, is_v5e = _tpu_config()
    vmem_limit = max(32 * 1024 * 1024, (vmem_bytes * 3) // 4)   # ~96 MiB v5e/v6e, ~48 MiB v7x
    vmem_limit = min(vmem_limit, vmem_bytes)
    max_block = vmem_limit // 6                                 # ~16 MiB / ~8 MiB
    target = vmem_limit // 8                                    # ~12 MiB / ~6 MiB
    if is_v5e:
        target = min(target, 8 * 1024 * 1024)                   # roofline knee is earlier on v5e
    if max_block_bytes is not None:
        max_block = min(max_block, max_block_bytes)
        target = min(target, max_block_bytes)

    # effective per-row VMEM bytes (lane dim is padded to a multiple of 128)
    row_bytes = _round_up(hw, 128) * itemsize
    # on v7x (2 TCs) make sure the 'parallel' axis has >= 4 steps when worthwhile
    min_blocks = (2 * num_tc) if (num_tc > 1 and nc * row_bytes >= 4 * 256 * 1024) else 1

    fused = min(sub, nc) * row_bytes <= max_block

    if fused:
        # -------- single fused kernel: whole H*W row per block (one HBM pass) --------
        row_block = _pick_row_block(nc, row_bytes, target, sub, min_blocks)
        # lane-chunk size so the in-kernel f32 temporary stays ~<= 2 MiB
        n_chunks = max(1, min(16, -(-(row_block * hw * 4) // (2 * 1024 * 1024))))
        chunk = -(-hw // n_chunks)
        if chunk < hw:
            chunk = min(hw, _round_up(chunk, 128))

        out2d = pl.pallas_call(
            _make_fused_kernel(hw, eps, chunk),
            out_shape=jax.ShapeDtypeStruct((nc, hw), x.dtype),
            grid_spec=pltpu.PrefetchScalarGridSpec(
                num_scalar_prefetch=0,
                grid=(pl.cdiv(nc, row_block),),
                in_specs=[
                    pl.BlockSpec((row_block, hw), lambda i: (i, 0)),
                    pl.BlockSpec((row_block, 2), lambda i: (i, 0)),
                ],
                out_specs=pl.BlockSpec((row_block, hw), lambda i: (i, 0)),
            ),
            compiler_params=pltpu.CompilerParams(
                dimension_semantics=("parallel",),
                vmem_limit_bytes=vmem_limit),
        )(x2d, gb)
    else:
        # -------- two-pass last resort (reads x from HBM twice = 1.5x traffic) --------
        if hw <= 128:
            col_block = hw
        else:
            col_cap = max(128, (target // (sub * itemsize)) // 128 * 128)
            col_block = max(128, min(col_cap, (hw // 128) * 128))
        row_block = _pick_row_block(nc, col_block * itemsize, target, sub, min_blocks)
        grid = (pl.cdiv(nc, row_block), pl.cdiv(hw, col_block))

        so2d = pl.pallas_call(
            _make_stats_kernel(hw, eps, col_block),
            out_shape=jax.ShapeDtypeStruct((nc, 2), jnp.float32),
            grid_spec=pltpu.PrefetchScalarGridSpec(
                num_scalar_prefetch=0,
                grid=grid,
                in_specs=[
                    pl.BlockSpec((row_block, col_block), lambda i, k: (i, k)),
                    pl.BlockSpec((row_block, 2), lambda i, k: (i, 0)),
                ],
                out_specs=pl.BlockSpec((row_block, 2), lambda i, k: (i, 0)),
                scratch_shapes=[pltpu.VMEM((row_block, 1), jnp.float32),
                                pltpu.VMEM((row_block, 1), jnp.float32),
                                pltpu.VMEM((row_block, 1), jnp.float32)],
            ),
            compiler_params=pltpu.CompilerParams(
                dimension_semantics=("parallel", "arbitrary"),
                vmem_limit_bytes=vmem_limit),
        )(x2d, gb)

        # TODO(synk): could alias x2d -> out (input_output_aliases={0: 0}) to drop the
        #             extra HBM output allocation; skipped since x may be live upstream.
        out2d = pl.pallas_call(
            _apply_kernel,
            out_shape=jax.ShapeDtypeStruct((nc, hw), x.dtype),
            grid_spec=pltpu.PrefetchScalarGridSpec(
                num_scalar_prefetch=0,
                grid=grid,
                in_specs=[
                    pl.BlockSpec((row_block, col_block), lambda i, k: (i, k)),
                    pl.BlockSpec((row_block, 2), lambda i, k: (i, 0)),
                ],
                out_specs=pl.BlockSpec((row_block, col_block), lambda i, k: (i, k)),
            ),
            compiler_params=pltpu.CompilerParams(
                dimension_semantics=("parallel", "parallel"),
                vmem_limit_bytes=vmem_limit),
        )(x2d, so2d)

    return out2d.reshape(n, c, h, w)


# --------------------------------- AdaIN op -------------------------------------
def adain_forward(x, s, fc_weight, fc_bias):
    """Non-live AdaIN forward: (1 + gamma) * InstanceNorm(x) + beta."""
    c = x.shape[1]
    # fc is far below one MXU tile (N x style_dim x 2C) -> plain XLA, no pallas_call
    h = s.astype(jnp.float32) @ fc_weight.astype(jnp.float32).T + fc_bias.astype(jnp.float32)
    gamma = h[:, :c]
    beta = h[:, c:]
    return adain_norm_pallas(x, gamma, beta)


# ------------------------------ reference (JAX) ----------------------------------
def norm_affine_reference(x, gamma, beta, eps=1e-6):
    n, c = x.shape[:2]
    flat = x.reshape(n, c, -1)
    mean = flat.mean(axis=2).reshape(n, c, 1, 1)
    var = flat.var(axis=2, ddof=1).reshape(n, c, 1, 1)   # unbiased, like torch
    x_norm = (x - mean) / jnp.sqrt(var + eps)
    return (1.0 + gamma.reshape(n, c, 1, 1)) * x_norm + beta.reshape(n, c, 1, 1)


def adain_reference(x, s, fc_weight, fc_bias):
    c = x.shape[1]
    h = s @ fc_weight.T + fc_bias
    return norm_affine_reference(x, h[:, :c], h[:, c:])


if __name__ == "__main__":
    # Small shapes consistent with the module: style_dim=32, num_features=4
    N, C, H, W = 2, 4, 16, 16
    STYLE_DIM = 32

    key = jax.random.PRNGKey(0)
    kx, ks, kw, kb, kx2, kg2, kb2, kx3, kg3, kb3 = jax.random.split(key, 10)

    x = jax.random.normal(kx, (N, C, H, W), dtype=jnp.float32)
    s = jax.random.normal(ks, (N, STYLE_DIM), dtype=jnp.float32)
    bound = 1.0 / (STYLE_DIM ** 0.5)
    fc_weight = jax.random.uniform(kw, (2 * C, STYLE_DIM), jnp.float32, -bound, bound)
    fc_bias = jax.random.uniform(kb, (2 * C,), jnp.float32, -bound, bound)

    # 1) main fused path via the full AdaIN forward
    ref = adain_reference(x, s, fc_weight, fc_bias)
    out = jax.block_until_ready(adain_forward(x, s, fc_weight, fc_bias))
    assert out.shape == (N, C, H, W)
    assert jnp.allclose(out, ref, atol=1e-4, rtol=1e-4), "fused path mismatch vs reference"

    # 2) fused path with a ragged row count (nc=15 not a multiple of 8) and ragged H*W
    x3 = jax.random.normal(kx3, (3, 5, 15, 10), dtype=jnp.float32)
    g3 = jax.random.normal(kg3, (3, 5), dtype=jnp.float32) * 0.1
    b3 = jax.random.normal(kb3, (3, 5), dtype=jnp.float32) * 0.1
    out3 = jax.block_until_ready(adain_norm_pallas(x3, g3, b3))
    assert jnp.allclose(out3, norm_affine_reference(x3, g3, b3),
                        atol=1e-4, rtol=1e-4), "ragged fused path mismatch vs reference"

    # 3) two-pass (large-H*W) fallback, aligned H*W, forced via tiny block budget
    h_full = s @ fc_weight.T + fc_bias
    gamma_t, beta_t = h_full[:, :C], h_full[:, C:]
    out2 = jax.block_until_ready(
        adain_norm_pallas(x, gamma_t, beta_t, max_block_bytes=4096))
    assert jnp.allclose(out2, ref, atol=1e-4, rtol=1e-4), "two-pass path mismatch vs reference"

    # 4) two-pass fallback with a ragged H*W (exercises in-kernel column masking)
    x4 = jax.random.normal(kx2, (2, 4, 15, 10), dtype=jnp.float32)
    g4 = jax.random.normal(kg2, (2, 4), dtype=jnp.float32) * 0.1
    b4 = jax.random.normal(kb2, (2, 4), dtype=jnp.float32) * 0.1
    out4 = jax.block_until_ready(
        adain_norm_pallas(x4, g4, b4, max_block_bytes=2048))
    assert jnp.allclose(out4, norm_affine_reference(x4, g4, b4),
                        atol=1e-4, rtol=1e-4), "ragged two-pass path mismatch vs reference"

    print("KERNEL_OK")
</pallas_src>

<mosaic_0001>
module attributes {stable_mosaic.version = 11 : i64} {
  func.func @kernel(%arg0: i32, %arg1: memref<8x256xf32, #tpu.memory_space<vmem>>, %arg2: memref<8x2xf32, #tpu.memory_space<vmem>>, %arg3: memref<8x256xf32, #tpu.memory_space<vmem>>) attributes {dimension_semantics = [#tpu.dimension_semantics<parallel>], iteration_bounds = array<i64: 1>, scalar_prefetch = 0 : i64, scratch_operands = 0 : i64, tpu.core_type = #tpu.core_type<tc>, window_params = [{transform_indices = @transform_0, window_bounds = array<i64: 8, 256>}, {transform_indices = @transform_1, window_bounds = array<i64: 8, 2>}, {transform_indices = @transform_2, window_bounds = array<i64: 8, 256>}]} {
    %c0 = arith.constant 0 : index
    %c0_0 = arith.constant 0 : index
    %0 = vector.load %arg1[%c0, %c0_0] : memref<8x256xf32, #tpu.memory_space<vmem>>, vector<8x1xf32>
    %cst = arith.constant 0.000000e+00 : f32
    %1 = vector.broadcast %cst : f32 to vector<8x1xf32>
    %cst_1 = arith.constant 0.000000e+00 : f32
    %2 = vector.broadcast %cst_1 : f32 to vector<8x1xf32>
    %c0_2 = arith.constant 0 : index
    %c0_3 = arith.constant 0 : index
    %3 = vector.load %arg1[%c0_2, %c0_3] : memref<8x256xf32, #tpu.memory_space<vmem>>, vector<8x256xf32>
    %4 = vector.broadcast %0 : vector<8x1xf32> to vector<8x256xf32>
    %5 = arith.subf %3, %4 : vector<8x256xf32>
    %cst_4 = arith.constant dense<0.000000e+00> : vector<8xf32>
    %6 = vector.multi_reduction <add>, %5, %cst_4 [1] : vector<8x256xf32> to vector<8xf32>
    %7 = vector.shape_cast %6 : vector<8xf32> to vector<8x1xf32>
    %8 = arith.addf %1, %7 : vector<8x1xf32>
    %9 = arith.mulf %5, %5 : vector<8x256xf32>
    %cst_5 = arith.constant dense<0.000000e+00> : vector<8xf32>
    %10 = vector.multi_reduction <add>, %9, %cst_5 [1] : vector<8x256xf32> to vector<8xf32>
    %11 = vector.shape_cast %10 : vector<8xf32> to vector<8x1xf32>
    %12 = arith.addf %2, %11 : vector<8x1xf32>
    %cst_6 = arith.constant 3.906250e-03 : f32
    %13 = vector.broadcast %cst_6 : f32 to vector<8x1xf32>
    %14 = arith.mulf %8, %13 : vector<8x1xf32>
    %cst_7 = arith.constant 2.560000e+02 : f32
    %15 = vector.broadcast %cst_7 : f32 to vector<8x1xf32>
    %16 = arith.mulf %15, %14 : vector<8x1xf32>
    %17 = arith.mulf %16, %14 : vector<8x1xf32>
    %18 = arith.subf %12, %17 : vector<8x1xf32>
    %cst_8 = arith.constant 0.00392156886 : f32
    %19 = vector.broadcast %cst_8 : f32 to vector<8x1xf32>
    %20 = arith.mulf %18, %19 : vector<8x1xf32>
    %cst_9 = arith.constant 0.000000e+00 : f32
    %21 = vector.broadcast %cst_9 : f32 to vector<8x1xf32>
    %22 = arith.maximumf %20, %21 : vector<8x1xf32>
    %cst_10 = arith.constant 9.99999997E-7 : f32
    %23 = vector.broadcast %cst_10 : f32 to vector<8x1xf32>
    %24 = arith.addf %22, %23 : vector<8x1xf32>
    %25 = math.rsqrt %24 : vector<8x1xf32>
    %c0_11 = arith.constant 0 : index
    %c0_12 = arith.constant 0 : index
    %26 = vector.load %arg2[%c0_11, %c0_12] : memref<8x2xf32, #tpu.memory_space<vmem>>, vector<8x1xf32>
    %27 = arith.mulf %26, %25 : vector<8x1xf32>
    %c0_13 = arith.constant 0 : index
    %c1 = arith.constant 1 : index
    %28 = vector.load %arg2[%c0_13, %c1] : memref<8x2xf32, #tpu.memory_space<vmem>>, vector<8x1xf32>
    %29 = arith.addf %0, %14 : vector<8x1xf32>
    %30 = arith.mulf %27, %29 : vector<8x1xf32>
    %31 = arith.subf %28, %30 : vector<8x1xf32>
    %c0_14 = arith.constant 0 : index
    %c0_15 = arith.constant 0 : index
    %32 = vector.load %arg1[%c0_14, %c0_15] : memref<8x256xf32, #tpu.memory_space<vmem>>, vector<8x256xf32>
    %33 = vector.broadcast %27 : vector<8x1xf32> to vector<8x256xf32>
    %34 = arith.mulf %32, %33 : vector<8x256xf32>
    %35 = vector.broadcast %31 : vector<8x1xf32> to vector<8x256xf32>
    %36 = arith.addf %34, %35 : vector<8x256xf32>
    %c0_16 = arith.constant 0 : index
    %c0_17 = arith.constant 0 : index
    %37 = vector.load %arg3[%c0_16, %c0_17] : memref<8x256xf32, #tpu.memory_space<vmem>>, vector<8x256xf32>
    tpu.vector_store %arg3[%c0_16, %c0_17], %36 {strides = array<i32>} : memref<8x256xf32, #tpu.memory_space<vmem>>, vector<8x256xf32>,
    return
  }
  func.func @transform_0(%arg0: i32) -> (i32, i32) {
    %c0_i32 = arith.constant 0 : i32
    %c0_i32_0 = arith.constant 0 : i32
    return %arg0, %c0_i32 : i32, i32
  }
  func.func @transform_1(%arg0: i32) -> (i32, i32) {
    %c0_i32 = arith.constant 0 : i32
    %c0_i32_0 = arith.constant 0 : i32
    return %arg0, %c0_i32 : i32, i32
  }
  func.func @transform_2(%arg0: i32) -> (i32, i32) {
    %c0_i32 = arith.constant 0 : i32
    %c0_i32_0 = arith.constant 0 : i32
    return %arg0, %c0_i32 : i32, i32
  }
}

</mosaic_0001>

<bundles_post_ra>
// kernel: tpu_custom_call.1
= control target key start
LH: loop header
LB: loop body
LE: loop exit
PB: predicated region body
PF: predicated region fallthrough
CT: control target
= control target key end

     0   :  { %7 = vsyncpa [#allocation3], 0  ;;  %s176_s0 = inlined_call_operand.hbm [shape: f32[8,256], index: 0, kind: input, shape index: {}]   ;;  %s177_s1 = inlined_call_operand.vmem [shape: f32[8,2], index: 1, kind: input, shape index: {}]   ;;  %s178_s2 = inlined_call_operand.hbm [shape: f32[8,256], index: 2, kind: output, shape index: {}]  }
   0x1   :  { %8 = vsyncpa [#allocation4], 0  ;;  %s147_s9 = smov [#allocation2]  }
   0x2   :  { %s15_s10 = sshll.u32 %s147_s9, 4  ;;  %s16_s10 = int_to_ptr.vmem [resolvable:$true] %s15_s10 }
   0x3   :  { %s111_s11 = scalar_lea.vmem %s16_s10, 256  ;;  %p116_p1 = scmp.lt.s32.totalorder %s16_s10, %s16_s10 }
   0x4   :  { %p112_p0 = scmp.ne.s32.totalorder %s16_s10, %s111_s11  ;;  %p117_p2 = scmp.lt.s32.totalorder %s111_s11, %s111_s11 }
   0x6   :  { %p118_p3 = por %p117_p2, %p116_p1 }
   0x8   :  { %p119_p4 = pnand %p118_p3, %p112_p0 }
   0xa   :  { %122 = shalt.err (!%p119_p4)
}
   0xb   :  { %18 = dma.hbm_to_vmem [thread:$0]  %s176_s0, 256, %s16_s10, [#allocation3]  }
   0xc   :  { %143 = dma.done.wait [#allocation3], 256  }
   0xd   :  { %144 = vsyncadd [#allocation3], 4294967040  ;;  %v148_v0 = vmov 0   ;;  %v24_v1 = vld [vmem:[#allocation2] sm:$0xff]  ;;  %v26_v2 = vld [vmem:[#allocation2 + $0x8] sm:$0xff]  ;;  %v149_v19 = vmov 1  }
   0xe   :  { %97 = vset.pattern.permute.xlu0 %v148_v0  ;;  %98 = vset.pattern.permute.xlu1 %v148_v0  ;;  %v52_v20 = vld [vmem:[%s177_s1] sm:$0xff]  ;;  %s150_s15 = smov 1   ;;  %s151_s16 = smov [#allocation5]  }
   0xf   :  { %29 = vperm.xlu0 %97, %v24_v1   ;;  %s83_s17 = sshll.u32 %s151_s16, 4  ;;  %s84_s17 = int_to_ptr.vmem [resolvable:$true] %s83_s17 }
  0x10   :  { %s123_s1 = scalar_lea.vmem %s84_s17, 256  ;;  %p128_p6 = scmp.lt.s32.totalorder %s84_s17, %s84_s17 }
  0x11   :  { %p124_p5 = scmp.ne.s32.totalorder %s84_s17, %s123_s1  ;;  %p129_p7 = scmp.lt.s32.totalorder %s123_s1, %s123_s1 }
  0x13   :  { %100 = vset.pattern.permute.xlu0 %v149_v19  ;;  %p130_p8 = por %p129_p7, %p128_p6 }
  0x15   :  { %p131_p9 = pnand %p130_p8, %p124_p5 }
  0x8a   :  { %v30_v3 = vpop.permute.xlu0 %29 }
  0x8b   :  { %v32_v4 = vsub.f32 %v24_v1, %v30_v3  ;;  %v33_v5 = vsub.f32 %v26_v2, %v30_v3 }
  0x8d   :  { %v34_v6 = vadd.f32 %v33_v5, %v32_v4  ;;  %v38_v7 = vmul.f32 %v32_v4, %v32_v4  ;;  %v39_v8 = vmul.f32 %v33_v5, %v33_v5 }
  0x8f   :  { %35 = vadd.xlane.f32.xlu0 %v34_v6  ;;  %v40_v9 = vadd.f32 %v39_v8, %v38_v7 }
  0x91   :  { %41 = vadd.xlane.f32.xlu1 %v40_v9 }
 0x118   :  { %v36_v10 = vpop.xlane.xlu0 %35 }
 0x119   :  { %v44_v11 = vmul.f32 0.00390625, %v36_v10 }
 0x11a   :  { %v42_v14 = vpop.xlane.xlu1 %41 }
 0x11b   :  { %v45_v12 = vmul.f32 256.0, %v44_v11  ;;  %v54_v22 = vadd.f32 %v44_v11, %v24_v1 }
 0x11d   :  { %v46_v13 = vmul.f32 %v45_v12, %v44_v11 }
 0x11f   :  { %v47_v15 = vsub.f32 %v42_v14, %v46_v13 }
 0x121   :  { %v48_v16 = vmul.f32 0.003921569, %v47_v15 }
 0x123   :  { %v49_v17 = vmax.f32 %v48_v16, 0.0 }
 0x125   :  { %v50_v18 = vadd.f32 1e-06, %v49_v17 }
 0x127   :  { %101 = vrsqrt.f32 %v50_v18 }
 0x134   :  { %v102_v21 = vpop.eup %101 }
 0x135   :  { %v53_v23 = vmul.f32 %v102_v21, %v52_v20 }
 0x137   :  { %v55_v24 = vmul.f32 %v54_v22, %v53_v23 }
 0x139   :  { %57 = vrot.lane.b32.xlu1 %v55_v24, %s150_s15 }
 0x13d   :  { %63 = vperm.xlu1 %98, %v53_v23  }
 0x141   :  { %99 = vset.pattern.permute.xlu1 %v149_v19 }
 0x1ab   :  { %v58_v25 = vpop.permute.xlu1 %57 }
 0x1ac   :  { %v60_v26 = vsub.f32 %v52_v20, %v58_v25 }
 0x1ae   :  { %70 = vperm.xlu1 %99, %v60_v26  }
 0x1b8   :  { %v64_v27 = vpop.permute.xlu1 %63 }
 0x1b9   :  { %v66_v28 = vmul.f32 %v64_v27, %v24_v1  ;;  %v67_v29 = vmul.f32 %v64_v27, %v26_v2 }
 0x229   :  { %v71_v30 = vpop.permute.xlu1 %70 }
 0x22a   :  { %v73_v31 = vadd.f32 %v71_v30, %v66_v28  ;;  %v74_v32 = vadd.f32 %v71_v30, %v67_v29 }
 0x22c   :  { %75 = vst [vmem:[#allocation5] sm:$0xff] %v73_v31  ;;  %76 = vst [vmem:[#allocation5 + $0x8] sm:$0xff] %v74_v32 }
 0x22d   :  { %134 = shalt.err (!%p131_p9)
}
 0x22e   :  { %86 = dma.vmem_to_hbm [thread:$0]  %s84_s17, 256, %s178_s2, [#allocation4]  }
 0x22f   :  { %145 = dma.done.wait [#allocation4], 256  }
 0x230   :  { %146 = vsyncadd [#allocation4], 4294967040 }
 0x231   :  { %90 = vsyncpa [#allocation3], 1 }
 0x232   :  { %91 = vsyncpa [#allocation4], 1 }

</bundles_post_ra>
